<compile_context>
chip_gen: v7x
topology: tpu7x:2x2x1
jax: 0.10.0
libtpu: 0.0.40
codegen_flags: <defaults>
</compile_context>

<pallas_src>
import functools
from typing import List

import jax
import jax.numpy as jnp
from jax import lax
from jax.experimental import pallas as pl
from jax.experimental.pallas import tpu as pltpu


# ----------------------------------------------------------------------------- #
# generation-aware sizing
# ----------------------------------------------------------------------------- #
def _detect_vmem_limit() -> int:
    """~75% of physical VMEM: ~96 MiB on v5e/v6e, ~48 MiB on v7x; safe fallback elsewhere."""
    try:
        cap = int(pltpu.get_tpu_info().vmem_capacity_bytes)
        return max(32 << 20, (cap * 3) // 4)
    except Exception:
        return 64 << 20


_VMEM_LIMIT = _detect_vmem_limit()
_STATS_BLOCK_BYTES = max(2 << 20, _VMEM_LIMIT // 16)   # per-block budget for the stats kernel
_MM_TKN = 2048 if _VMEM_LIMIT >= (80 << 20) else 1024  # matmul K/N tile target (per generation)


def _round_up(x: int, m: int) -> int:
    return (x + m - 1) // m * m


def _pick_tile(n: int, target: int, align: int = 8) -> int:
    """Largest divisor of n that is <= target and (a multiple of `align` or == n).
    Divisor tiles mean no per-call weight padding and no padded-output copies."""
    for cand in range(max(1, min(int(target), n)), 0, -1):
        if n % cand == 0 and (cand % align == 0 or cand == n):
            return cand
    return n


# ----------------------------------------------------------------------------- #
# Kernel 1: tiled bf16 MXU matmul, f32 accumulator, fused bias (+ optional tanh)
# ----------------------------------------------------------------------------- #
def _matmul_kernel(x_ref, w_ref, b_ref, o_ref, acc_ref, *, activation):
    k = pl.program_id(2)

    @pl.when(k == 0)
    def _init():
        acc_ref[...] = jnp.zeros_like(acc_ref)

    acc_ref[...] += jnp.dot(x_ref[...], w_ref[...], preferred_element_type=jnp.float32)

    @pl.when(k == pl.num_programs(2) - 1)
    def _finalize():
        y = acc_ref[...] + b_ref[...]
        if activation == "tanh":
            y = jnp.tanh(y)
        o_ref[...] = y.astype(o_ref.dtype)


def dense(x, w, b, activation=None, *, tm_target=256, tk_target=None, tn_target=None):
    """y = x @ w + b (optionally tanh). x: [M,K], w: [K,N], b: [N]."""
    M, K = x.shape
    Kw, N = w.shape
    assert K == Kw
    tk_target = tk_target or _MM_TKN
    tn_target = tn_target or _MM_TKN
    x = x.astype(jnp.bfloat16)        # halve activation HBM read / VMEM footprint (MXU is bf16)
    w = w.astype(jnp.bfloat16)
    Mp = _round_up(M, 16)             # bf16 sublane packing; only activations ever get padded
    if Mp != M:
        x = jnp.pad(x, ((0, Mp - M), (0, 0)))
    tm = _pick_tile(Mp, tm_target, align=16)
    tk = _pick_tile(K, tk_target, align=128)   # divisors of K/N: no weight/bias padding per call
    tn = _pick_tile(N, tn_target, align=128)
    out = pl.pallas_call(
        functools.partial(_matmul_kernel, activation=activation),
        grid=(Mp // tm, N // tn, K // tk),
        in_specs=[pl.BlockSpec((tm, tk), lambda i, j, k: (i, k)),
                  pl.BlockSpec((tk, tn), lambda i, j, k: (k, j)),
                  pl.BlockSpec((1, tn), lambda i, j, k: (0, j))],
        out_specs=pl.BlockSpec((tm, tn), lambda i, j, k: (i, j)),
        out_shape=jax.ShapeDtypeStruct((Mp, N), jnp.float32),
        scratch_shapes=[pltpu.VMEM((tm, tn), jnp.float32)],
        compiler_params=pltpu.CompilerParams(
            dimension_semantics=("parallel", "parallel", "arbitrary"),
            vmem_limit_bytes=_VMEM_LIMIT),
    )(x, w, b.astype(jnp.float32).reshape(1, N))
    return out[:M] if Mp != M else out


# ----------------------------------------------------------------------------- #
# Kernel 2: input-side corruption stats + in-kernel quantize / bit-flip
# ----------------------------------------------------------------------------- #
def _input_stats_kernel(inp_ref, stats_ref, fdq_ref, *, seed, flip_threshold, total_per_batch):
    s = pl.program_id(1)

    @pl.when(s == 0)
    def _init():
        stats_ref[...] = jnp.zeros_like(stats_ref)

    inp = inp_ref[...].astype(jnp.float32)                       # [bt, ts, H]
    bt, ts, _ = inp.shape
    # TODO(synk): Quantizer is undefined in the source; bf16 round-trip stand-in.
    deq = inp.astype(jnp.bfloat16).astype(jnp.float32)

    # TODO(synk): FloatFlipper is undefined in the source; deterministic per-element integer
    # hash decides whether to flip the bf16 exponent MSB (bit 30 of the f32 view).  Pure VPU
    # integer ops (no pltpu PRNG) so the kernel also runs under the Pallas interpreter.
    b0 = pl.program_id(0) * bt
    s0 = s * ts
    bi = (lax.broadcasted_iota(jnp.int32, inp.shape, 0) + b0).astype(jnp.uint32)
    si = (lax.broadcasted_iota(jnp.int32, inp.shape, 1) + s0).astype(jnp.uint32)
    hi = lax.broadcasted_iota(jnp.int32, inp.shape, 2).astype(jnp.uint32)
    u = ((bi * jnp.uint32(0x9E3779B1)) ^ (si * jnp.uint32(0x85EBCA77))
         ^ (hi * jnp.uint32(0xC2B2AE3D)) ^ jnp.uint32(seed))
    u = u ^ (u >> jnp.uint32(15))
    u = u * jnp.uint32(0x2C1B3C6D)
    u = u ^ (u >> jnp.uint32(12))
    u = u * jnp.uint32(0x297A2D39)
    u = u ^ (u >> jnp.uint32(15))
    do_flip = (u & jnp.uint32(0xFFFFFF)) < jnp.uint32(flip_threshold)

    dbits = lax.bitcast_convert_type(deq, jnp.uint32)
    fbits = jnp.where(do_flip, dbits ^ jnp.uint32(0x40000000), dbits)
    fdq = lax.bitcast_convert_type(fbits, jnp.float32)
    fdq_ref[...] = fdq.astype(jnp.bfloat16)                      # exact: values are bf16-valued

    invalid = jnp.isinf(fdq) | jnp.isnan(fdq)
    valid = jnp.logical_not(invalid)

    def psum(v):                                                 # sublane-axis sums first,
        return v.sum(axis=1).sum(axis=-1, keepdims=True)         # one lane reduce -> [bt, 1]

    # TODO(synk): counts accumulate in f32; exact only while S*H per batch < 2^24.
    n_inval = psum(invalid.astype(jnp.float32))
    # TODO(synk): batch_masked_loss is undefined in the source; per-batch mean L1 over
    # entries not masked by the faulty-value invalid mask (matches the torch call pattern).
    d_bit = psum(jnp.where(valid, jnp.abs(deq - fdq), 0.0))
    d_unp = psum(jnp.where(valid, jnp.abs(inp - deq), 0.0))
    d_per = psum(jnp.where(valid, jnp.abs(inp - fdq), 0.0))

    lanes = lax.broadcasted_iota(jnp.int32, stats_ref.shape, 1)  # lane-dense packed stats
    stats_ref[...] += (jnp.where(lanes == 0, n_inval, 0.0)
                       + jnp.where(lanes == 1, d_bit, 0.0)
                       + jnp.where(lanes == 2, d_unp, 0.0)
                       + jnp.where(lanes == 3, d_per, 0.0))

    @pl.when(s == pl.num_programs(1) - 1)
    def _finalize():
        acc = stats_ref[...]
        n_valid = jnp.maximum(float(total_per_batch) - acc[:, 0:1], 1.0)   # no extra reduction
        mae_cols = (lanes >= 1) & (lanes <= 3)
        stats_ref[...] = jnp.where(mae_cols, acc / n_valid, acc)


def input_stats_and_flip(inp, seed: int, flip_probability: float):
    """Returns (stats [B,128] f32, faulty_dequantized [B,S,H] bf16).
    stats lanes: 0=#invalid, 1=bit-error MAE, 2=unperturbed MAE, 3=perturbed MAE."""
    B, S, H = inp.shape
    # VMEM-budget-driven tiles: f32 input + bf16 faulty output = 6 bytes per element.
    row_bytes = H * 6
    ts = _pick_tile(S, max(16, _STATS_BLOCK_BYTES // row_bytes), align=16)
    bt = 1
    if ts == S:
        bt = _pick_tile(B, max(1, _STATS_BLOCK_BYTES // max(1, S * row_bytes)), align=1)
    stats, fdq = pl.pallas_call(
        functools.partial(_input_stats_kernel,
                          seed=int(seed) & 0xFFFFFFFF,
                          flip_threshold=int(round(flip_probability * (1 << 24))),
                          total_per_batch=S * H),
        grid=(B // bt, S // ts),
        in_specs=[pl.BlockSpec((bt, ts, H), lambda b, s: (b, s, 0))],
        out_specs=[pl.BlockSpec((bt, 128), lambda b, s: (b, 0)),
                   pl.BlockSpec((bt, ts, H), lambda b, s: (b, s, 0))],
        out_shape=[jax.ShapeDtypeStruct((B, 128), jnp.float32),
                   jax.ShapeDtypeStruct((B, S, H), jnp.bfloat16)],
        compiler_params=pltpu.CompilerParams(
            dimension_semantics=("parallel", "arbitrary"),
            vmem_limit_bytes=_VMEM_LIMIT),
    )(inp)
    return stats, fdq


# ----------------------------------------------------------------------------- #
# Kernel 3: fused clean+faulty lm_head matmul with output-side stats in the epilogue
# ----------------------------------------------------------------------------- #
def _lmhead_stats_kernel(*refs, n_copies, big_idx):
    x_refs = refs[:n_copies]
    w_ref = refs[n_copies]
    b_ref = refs[n_copies + 1]
    o_ref = refs[n_copies + 2]
    stats_ref = refs[n_copies + 3]
    acc_ref, mx_ref, ag_ref, inv_ref, l1_ref = refs[n_copies + 4:]

    j = pl.program_id(1)
    k = pl.program_id(2)
    nj = pl.num_programs(1)
    nk = pl.num_programs(2)
    tm, tn = acc_ref.shape[1], acc_ref.shape[2]

    @pl.when(k == 0)
    def _zero_acc():
        acc_ref[...] = jnp.zeros_like(acc_ref)

    w_tile = w_ref[...]                                          # streamed once per (i, j, k)
    for c in range(n_copies):                                    # all copies reuse the tile
        acc_ref[c] += jnp.dot(x_refs[c][...], w_tile, preferred_element_type=jnp.float32)

    @pl.when((k == nk - 1) & (j == 0))
    def _init_stats():
        mx_ref[...] = jnp.full_like(mx_ref, -jnp.inf)
        ag_ref[...] = jnp.zeros_like(ag_ref)
        inv_ref[...] = jnp.zeros_like(inv_ref)
        l1_ref[...] = jnp.zeros_like(l1_ref)

    @pl.when(k == nk - 1)
    def _epilogue():
        bias = b_ref[...]                                        # [1, tn]
        col = (lax.broadcasted_iota(jnp.int32, (tm, tn), 1) + j * tn).astype(jnp.float32)

        def update_argmax(c, logits):                            # running first-max argmax
            tmax = jnp.max(logits, axis=-1, keepdims=True)       # [tm, 1]
            targ = jnp.min(jnp.where(logits == tmax, col, jnp.float32(big_idx)),
                           axis=-1, keepdims=True)
            better = tmax > mx_ref[c]
            ag_ref[c] = jnp.where(better, targ, ag_ref[c])
            mx_ref[c] = jnp.maximum(mx_ref[c], tmax)

        logits0 = acc_ref[0] + bias                              # clean logits tile
        o_ref[...] = logits0.astype(o_ref.dtype)                 # only clean logits hit HBM
        update_argmax(0, logits0)                                # clean argmax computed once

        for c in range(1, n_copies):                             # faulty copies: stats only
            flog = acc_ref[c] + bias
            inval = jnp.isinf(flog) | jnp.isnan(flog)
            inv_ref[c - 1] += jnp.sum(inval.astype(jnp.float32), axis=-1, keepdims=True)
            l1_ref[c - 1] += jnp.sum(jnp.where(inval, 0.0, jnp.abs(logits0 - flog)),
                                     axis=-1, keepdims=True)
            update_argmax(c, flog)

    @pl.when((k == nk - 1) & (j == nj - 1))
    def _finalize():
        lanes = lax.broadcasted_iota(jnp.int32, stats_ref.shape[1:], 1)
        for c in range(1, n_copies):
            mism = (ag_ref[c] != ag_ref[0]).astype(jnp.float32)  # [tm, 1]
            stats_ref[c - 1] = (jnp.where(lanes == 0, inv_ref[c - 1], 0.0)
                                + jnp.where(lanes == 1, l1_ref[c - 1], 0.0)
                                + jnp.where(lanes == 2, mism, 0.0))


def lmhead_fused(xs, w, b, *, tm_target=256, tk_target=None, tn_target=1024):
    """xs: list of [M,H] activations (clean first, then faulty copies).
    Returns (clean logits [M,V] f32, per-row stats [C,M,128] f32 with lanes
    0=#invalid faulty logits, 1=masked |clean-faulty| L1 sum, 2=argmax mismatch)."""
    n_copies = len(xs)
    M, K = xs[0].shape
    Kw, N = w.shape
    assert K == Kw
    tk_target = tk_target or _MM_TKN
    if n_copies > 2:                       # keep (1+C) accumulators within the VMEM budget
        tm_target = 128
    xs = [x.astype(jnp.bfloat16) for x in xs]
    w = w.astype(jnp.bfloat16)
    Mp = _round_up(M, 16)
    if Mp != M:
        xs = [jnp.pad(x, ((0, Mp - M), (0, 0))) for x in xs]
    tm = _pick_tile(Mp, tm_target, align=16)
    tk = _pick_tile(K, tk_target, align=128)
    tn = _pick_tile(N, tn_target, align=128)
    C = n_copies - 1
    x_spec = pl.BlockSpec((tm, tk), lambda i, j, k: (i, k))
    logits, row_stats = pl.pallas_call(
        functools.partial(_lmhead_stats_kernel, n_copies=n_copies, big_idx=N),
        grid=(Mp // tm, N // tn, K // tk),
        in_specs=[x_spec] * n_copies + [
            pl.BlockSpec((tk, tn), lambda i, j, k: (k, j)),
            pl.BlockSpec((1, tn), lambda i, j, k: (0, j)),
        ],
        out_specs=[pl.BlockSpec((tm, tn), lambda i, j, k: (i, j)),
                   pl.BlockSpec((C, tm, 128), lambda i, j, k: (0, i, 0))],
        out_shape=[jax.ShapeDtypeStruct((Mp, N), jnp.float32),
                   jax.ShapeDtypeStruct((C, Mp, 128), jnp.float32)],
        scratch_shapes=[pltpu.VMEM((n_copies, tm, tn), jnp.float32),   # accumulators
                        pltpu.VMEM((n_copies, tm, 1), jnp.float32),    # running max
                        pltpu.VMEM((n_copies, tm, 1), jnp.float32),    # running argmax
                        pltpu.VMEM((C, tm, 1), jnp.float32),           # invalid count
                        pltpu.VMEM((C, tm, 1), jnp.float32)],          # masked L1 sum
        compiler_params=pltpu.CompilerParams(
            dimension_semantics=("parallel", "arbitrary", "arbitrary"),
            vmem_limit_bytes=_VMEM_LIMIT),
    )(*xs, w, b.astype(jnp.float32).reshape(1, N))
    if Mp != M:
        logits = logits[:M]
        row_stats = row_stats[:, :M]
    return logits, row_stats


# ----------------------------------------------------------------------------- #
# Model / hook machinery (mirrors the torch module structure)
# ----------------------------------------------------------------------------- #
class LMHead:
    """Stands in for model.lm_head (a Linear with torch-style forward hooks)."""

    def __init__(self, w, b):
        self.w, self.b = w, b                   # w: [H, V] bf16, b: [V] f32
        self._forward_hooks = {}
        self._forward_pre_hooks = {}

    def forward_only(self, h):                  # hook-free forward
        B, S, H = h.shape
        return dense(h.reshape(B * S, H), self.w, self.b).reshape(B, S, -1)

    def __call__(self, h):
        hooks = list(self._forward_hooks.values())
        for hook in hooks:
            if hasattr(hook, "run_fused"):      # fused clean+faulty lm_head path
                return hook.run_fused(self, h)
        out = self.forward_only(h)
        for hook in hooks:
            hook(self, (h,), out)
        return out


class TinyLM:
    """Minimal stand-in model: embed -> dense+tanh backbone -> lm_head."""

    def __init__(self, key, vocab_in, hidden, vocab_out):
        k1, k2, k3, k4, k5 = jax.random.split(key, 5)
        self.embed = 0.02 * jax.random.normal(k1, (vocab_in, hidden), jnp.float32)
        self.w1 = (0.02 * jax.random.normal(k2, (hidden, hidden), jnp.float32)).astype(jnp.bfloat16)
        self.b1 = 0.01 * jax.random.normal(k4, (hidden,), jnp.float32)
        w2 = (0.02 * jax.random.normal(k3, (hidden, vocab_out), jnp.float32)).astype(jnp.bfloat16)
        b2 = 0.01 * jax.random.normal(k5, (vocab_out,), jnp.float32)
        self.lm_head = LMHead(w2, b2)

    def __call__(self, input_ids):
        h = jnp.take(self.embed, input_ids, axis=0)              # [B, S, H] (gather glue)
        B, S, H = h.shape
        h = dense(h.reshape(B * S, H), self.w1, self.b1, activation="tanh").reshape(B, S, H)
        return self.lm_head(h)


class Corruption:
    """Mirrors the torch Corruption hook; all heavy math runs in the Pallas kernels."""

    def __init__(self, name, flip_probability, seed):
        self.name = name
        self.flip_probability = flip_probability
        self.seed = seed
        self.invalid_entries_lst = []
        self.bit_error_mae_lst = []
        self.unperturbed_error_mae_lst = []
        self.perturbed_error_mae_lst = []
        self.invalid_output_entries_lst = []
        self.distance_output_lst = []
        self.num_different_predictions_lst = []

    def input_stats_and_faulty(self, inp):
        return input_stats_and_flip(inp, self.seed, self.flip_probability)

    def record(self, in_stats, inv_out, dist_out, ndiff):
        s_in, io, do, nd = jax.device_get((in_stats, inv_out, dist_out, ndiff))  # one host sync
        self.invalid_entries_lst.extend(s_in[:, 0].astype(int).tolist())
        self.bit_error_mae_lst.extend(s_in[:, 1].tolist())
        self.unperturbed_error_mae_lst.extend(s_in[:, 2].tolist())
        self.perturbed_error_mae_lst.extend(s_in[:, 3].tolist())
        self.invalid_output_entries_lst.extend(io.astype(int).tolist())
        self.distance_output_lst.extend(do.tolist())
        self.num_different_predictions_lst.extend(nd.astype(int).tolist())


class _FusedCorruptionHook:
    """Forward hook on lm_head: evaluates the clean and all faulty activations in ONE fused
    matmul+stats kernel (weight tile streamed once per M tile, faulty logits never written to
    HBM, clean argmax computed once), replacing the torch pop-hook / re-run-module dance."""

    def __init__(self, corruptions):
        self.corruptions = corruptions

    def run_fused(self, module, h):
        if not self.corruptions:
            return module.forward_only(h)
        B, S, H = h.shape
        M = B * S
        xs = [h.reshape(M, H)]                                   # clean activations
        in_stats = []
        for c in self.corruptions:
            st, fdq = c.input_stats_and_faulty(h)                # Pallas kernel 2
            in_stats.append(st)
            xs.append(fdq.reshape(M, H))                         # already bf16
        logits, row_stats = lmhead_fused(xs, module.w, module.b)  # Pallas kernel 3 (fused)
        V = logits.shape[-1]
        out = logits.reshape(B, S, V)
        # tiny per-batch reductions of the per-row stats (plain JAX, negligible)
        rs = row_stats.reshape(len(self.corruptions), B, S, 128)
        inv = rs[..., 0].sum(axis=2)                             # [C, B] invalid faulty logits
        l1 = rs[..., 1].sum(axis=2)
        dist = l1 / jnp.maximum(float(S * V) - inv, 1.0)         # masked mean L1 per batch
        ndiff = rs[..., 2].sum(axis=2)                           # argmax mismatches per batch
        for i, c in enumerate(self.corruptions):
            c.record(in_stats[i], inv[i], dist[i], ndiff[i])
        return out


class TrackerModule:
    def __init__(self, model, corruptions: List[Corruption]):
        self.model = model
        self.corruptions = corruptions
        self.set_hooks()

    def set_hooks(self):
        self.model.lm_head._forward_hooks.clear()
        self.model.lm_head._forward_pre_hooks.clear()
        self.model.lm_head._forward_hooks[0] = _FusedCorruptionHook(self.corruptions)

    def remove_hooks(self):
        self.model.lm_head._forward_hooks.clear()
        self.model.lm_head._forward_pre_hooks.clear()

    def forward(self, **kwargs):
        return self.model(**kwargs)


# ----------------------------------------------------------------------------- #
if __name__ == "__main__":
    B, S, H, V_OUT, V_IN = 2, 8, 32, 128, 64

    root = jax.random.PRNGKey(0)
    k_ids, k_model = jax.random.split(root)
    input_ids = jax.random.randint(k_ids, (B, S), 0, V_IN)

    model = TinyLM(k_model, V_IN, H, V_OUT)
    corruptions = [Corruption("bfloat16", flip_probability=0.05, seed=123)]
    tracker = TrackerModule(model, corruptions)

    logits = tracker.forward(input_ids=input_ids)
    jax.block_until_ready(logits)

    # pure-JAX reference for the clean forward path (same bf16 MXU casts as the kernels)
    emb = jnp.take(model.embed, input_ids, axis=0).reshape(B * S, H)
    h_ref = jnp.tanh(jnp.dot(emb.astype(jnp.bfloat16), model.w1,
                             preferred_element_type=jnp.float32) + model.b1)
    ref = (jnp.dot(h_ref.astype(jnp.bfloat16), model.lm_head.w,
                   preferred_element_type=jnp.float32) + model.lm_head.b).reshape(B, S, V_OUT)

    assert logits.shape == (B, S, V_OUT)
    assert bool(jnp.allclose(logits, ref, atol=1e-3, rtol=1e-2)), "clean logits mismatch"
    c = corruptions[0]
    for lst in (c.invalid_entries_lst, c.bit_error_mae_lst, c.unperturbed_error_mae_lst,
                c.perturbed_error_mae_lst, c.invalid_output_entries_lst,
                c.distance_output_lst, c.num_different_predictions_lst):
        assert len(lst) == B
    print("KERNEL_OK")
</pallas_src>

<mosaic_0001>
module attributes {stable_mosaic.version = 11 : i64} {
  func.func @_matmul_kernel(%arg0: i32, %arg1: i32, %arg2: i32, %arg3: memref<16x32xbf16, #tpu.memory_space<vmem>>, %arg4: memref<32x32xbf16, #tpu.memory_space<vmem>>, %arg5: memref<1x32xf32, #tpu.memory_space<vmem>>, %arg6: memref<16x32xf32, #tpu.memory_space<vmem>>, %arg7: memref<16x32xf32, #tpu.memory_space<vmem>>) attributes {dimension_semantics = [#tpu.dimension_semantics<parallel>, #tpu.dimension_semantics<parallel>, #tpu.dimension_semantics<arbitrary>], iteration_bounds = array<i64: 1, 1, 1>, scalar_prefetch = 0 : i64, scratch_operands = 1 : i64, tpu.core_type = #tpu.core_type<tc>, window_params = [{transform_indices = @transform_0, window_bounds = array<i64: 16, 32>}, {transform_indices = @transform_1, window_bounds = array<i64: 32, 32>}, {transform_indices = @transform_2, window_bounds = array<i64: 1, 32>}, {transform_indices = @transform_3, window_bounds = array<i64: 16, 32>}]} {
    %c0_i32 = arith.constant 0 : i32
    %0 = arith.cmpi eq, %arg2, %c0_i32 : i32
    %1 = arith.extui %0 : i1 to i32
    %c0_i32_0 = arith.constant 0 : i32
    %2 = arith.cmpi ne, %1, %c0_i32_0 : i32
    scf.if %2 {
      %cst_10 = arith.constant 0.000000e+00 : f32
      %12 = vector.broadcast %cst_10 : f32 to vector<16x32xf32>
      %c0_11 = arith.constant 0 : index
      %c0_12 = arith.constant 0 : index
      %13 = vector.load %arg7[%c0_11, %c0_12] : memref<16x32xf32, #tpu.memory_space<vmem>>, vector<16x32xf32>
      tpu.vector_store %arg7[%c0_11, %c0_12], %12 {strides = array<i32>} : memref<16x32xf32, #tpu.memory_space<vmem>>, vector<16x32xf32>,
    } else {
    }
    %c0 = arith.constant 0 : index
    %c0_1 = arith.constant 0 : index
    %3 = vector.load %arg7[%c0, %c0_1] : memref<16x32xf32, #tpu.memory_space<vmem>>, vector<16x32xf32>
    %c0_2 = arith.constant 0 : index
    %c0_3 = arith.constant 0 : index
    %4 = vector.load %arg3[%c0_2, %c0_3] : memref<16x32xbf16, #tpu.memory_space<vmem>>, vector<16x32xbf16>
    %c0_4 = arith.constant 0 : index
    %c0_5 = arith.constant 0 : index
    %5 = vector.load %arg4[%c0_4, %c0_5] : memref<32x32xbf16, #tpu.memory_space<vmem>>, vector<32x32xbf16>
    %cst = arith.constant dense<0.000000e+00> : vector<16x32xf32>
    %6 = tpu.matmul %4, %5, %cst {dimension_numbers = #tpu.dot_dimension_numbers<[1], [0], [0], [1], [0, 0, 1, 1], [], []>} : vector<16x32xbf16>, vector<32x32xbf16>, vector<16x32xf32> -> vector<16x32xf32>
    %7 = arith.addf %3, %6 : vector<16x32xf32>
    %c0_6 = arith.constant 0 : index
    %c0_7 = arith.constant 0 : index
    %8 = vector.load %arg7[%c0_6, %c0_7] : memref<16x32xf32, #tpu.memory_space<vmem>>, vector<16x32xf32>
    tpu.vector_store %arg7[%c0_6, %c0_7], %7 {strides = array<i32>} : memref<16x32xf32, #tpu.memory_space<vmem>>, vector<16x32xf32>,
    %c0_i32_8 = arith.constant 0 : i32
    %9 = arith.cmpi eq, %arg2, %c0_i32_8 : i32
    %10 = arith.extui %9 : i1 to i32
    %c0_i32_9 = arith.constant 0 : i32
    %11 = arith.cmpi ne, %10, %c0_i32_9 : i32
    scf.if %11 {
      %c0_10 = arith.constant 0 : index
      %c0_11 = arith.constant 0 : index
      %12 = vector.load %arg7[%c0_10, %c0_11] : memref<16x32xf32, #tpu.memory_space<vmem>>, vector<16x32xf32>
      %c0_12 = arith.constant 0 : index
      %c0_13 = arith.constant 0 : index
      %13 = vector.load %arg5[%c0_12, %c0_13] : memref<1x32xf32, #tpu.memory_space<vmem>>, vector<1x32xf32>
      %14 = vector.broadcast %13 : vector<1x32xf32> to vector<16x32xf32>
      %15 = arith.addf %12, %14 : vector<16x32xf32>
      %16 = math.tanh %15 : vector<16x32xf32>
      %c0_14 = arith.constant 0 : index
      %c0_15 = arith.constant 0 : index
      %17 = vector.load %arg6[%c0_14, %c0_15] : memref<16x32xf32, #tpu.memory_space<vmem>>, vector<16x32xf32>
      tpu.vector_store %arg6[%c0_14, %c0_15], %16 {strides = array<i32>} : memref<16x32xf32, #tpu.memory_space<vmem>>, vector<16x32xf32>,
    } else {
    }
    return
  }
  func.func @transform_0(%arg0: i32, %arg1: i32, %arg2: i32) -> (i32, i32) {
    %c0_i32 = arith.constant 0 : i32
    return %arg0, %arg2 : i32, i32
  }
  func.func @transform_1(%arg0: i32, %arg1: i32, %arg2: i32) -> (i32, i32) {
    %c0_i32 = arith.constant 0 : i32
    return %arg2, %arg1 : i32, i32
  }
  func.func @transform_2(%arg0: i32, %arg1: i32, %arg2: i32) -> (i32, i32) {
    %c0_i32 = arith.constant 0 : i32
    %c0_i32_0 = arith.constant 0 : i32
    return %c0_i32, %arg1 : i32, i32
  }
  func.func @transform_3(%arg0: i32, %arg1: i32, %arg2: i32) -> (i32, i32) {
    %c0_i32 = arith.constant 0 : i32
    return %arg0, %arg1 : i32, i32
  }
}

</mosaic_0001>

<bundles_post_ra>
// kernel: tpu_custom_call.1
= control target key start
LH: loop header
LB: loop body
LE: loop exit
PB: predicated region body
PF: predicated region fallthrough
CT: control target
= control target key end

     0   :  { %8 = vsyncpa [#allocation4], 0  ;;  %s391_s0 = inlined_call_operand.hbm [shape: bf16[16,32], index: 0, kind: input, shape index: {}]   ;;  %s392_s1 = inlined_call_operand.hbm [shape: bf16[32,32], index: 1, kind: input, shape index: {}]   ;;  %s393_s2 = inlined_call_operand.hbm [shape: f32[1,32], index: 2, kind: input, shape index: {}]   ;;  %s394_s3 = inlined_call_operand.hbm [shape: f32[16,32], index: 3, kind: output, shape index: {}]  }
   0x1   :  { %9 = vsyncpa [#allocation7], 0 }
   0x2   :  { %10 = vsyncpa [#allocation5], 0  ;;  %s299_s12 = smov [#allocation6]   ;;  %s300_s14 = smov [#allocation3]  }
   0x3   :  { %s28_s13 = sshll.u32 %s299_s12, 4  ;;  %s16_s15 = sshll.u32 %s300_s14, 4  ;;  %s29_s13 = int_to_ptr.vmem [resolvable:$true] %s28_s13  ;;  %s329_s15 = int_to_ptr.vmem [resolvable:$true] %s16_s15 }
   0x4   :  { %s205_s18 = scalar_lea.hbm %s392_s1, 256 }
   0x5   :  { %p206_p0 = scmp.ne.s32.totalorder %s392_s1, %s205_s18  ;;  %p209_p1 = scmp.lt.u32.totalorder %s205_s18, %s392_s1 }
   0x7   :  { %p211_p2 = pnand %p209_p1, %p206_p0 }
   0x9   :  { %214 = shalt.err (!%p211_p2)
}
   0xa   :  { %s215_s23 = scalar_lea.vmem %s29_s13, 256  ;;  %p220_p4 = scmp.lt.s32.totalorder %s29_s13, %s29_s13 }
   0xb   :  { %p216_p3 = scmp.ne.s32.totalorder %s29_s13, %s215_s23  ;;  %p221_p5 = scmp.lt.s32.totalorder %s215_s23, %s215_s23 }
   0xd   :  { %p222_p6 = por %p221_p5, %p220_p4 }
   0xf   :  { %p223_p7 = pnand %p222_p6, %p216_p3 }
  0x11   :  { %226 = shalt.err (!%p223_p7)
}
  0x12   :  { %s301_s24 = smov 64   ;;  %s302_s25 = smov 4  }
  0x13   :  { %34 = dma.hbm_to_vmem [thread:$0]  %s392_s1, 256, %s29_s13, [#allocation7], %s301_s24, %s301_s24, %s302_s25  }
  0x14   :  { %s227_s30 = scalar_lea.hbm %s391_s0, 128 }
  0x15   :  { %p228_p8 = scmp.ne.s32.totalorder %s391_s0, %s227_s30  ;;  %p231_p9 = scmp.lt.u32.totalorder %s227_s30, %s391_s0 }
  0x17   :  { %p233_p10 = pnand %p231_p9, %p228_p8 }
  0x19   :  { %236 = shalt.err (!%p233_p10)
}
  0x1a   :  { %s237_s8 = scalar_lea.vmem %s329_s15, 128  ;;  %p242_p12 = scmp.lt.s32.totalorder %s329_s15, %s329_s15 }
  0x1b   :  { %p238_p11 = scmp.ne.s32.totalorder %s329_s15, %s237_s8  ;;  %p243_p13 = scmp.lt.s32.totalorder %s237_s8, %s237_s8 }
  0x1d   :  { %p244_p0 = por %p243_p13, %p242_p12 }
  0x1f   :  { %p245_p1 = pnand %p244_p0, %p238_p11 }
  0x21   :  { %248 = shalt.err (!%p245_p1)
}
  0x22   :  { %22 = dma.hbm_to_vmem [thread:$0]  %s391_s0, 128, %s329_s15, [#allocation4], %s301_s24, %s301_s24, %s302_s25  }
  0x23   :  { %s303_s10 = smov [#allocation8]   ;;  %s249_s14 = scalar_lea.hbm %s393_s2, 16 }
  0x24   :  { %s41_s11 = sshll.u32 %s303_s10, 4  ;;  %p250_p2 = scmp.ne.s32.totalorder %s393_s2, %s249_s14  ;;  %s42_s11 = int_to_ptr.vmem [resolvable:$true] %s41_s11 }
  0x25   :  { %p253_p3 = scmp.lt.u32.totalorder %s249_s14, %s393_s2 }
  0x27   :  { %p255_p4 = pnand %p253_p3, %p250_p2 }
  0x29   :  { %258 = shalt.err (!%p255_p4)
}
  0x2a   :  { %s259_s20 = scalar_lea.vmem %s42_s11, 16  ;;  %s263_s0 = scalar_lea.vmem %s42_s11, 32 }
  0x2b   :  { %p260_p5 = scmp.ne.s32.totalorder %s42_s11, %s259_s20  ;;  %p264_p6 = scmp.lt.s32.totalorder %s42_s11, %s42_s11 }
  0x2c   :  { %p265_p7 = scmp.lt.s32.totalorder %s263_s0, %s259_s20 }
  0x2e   :  { %p266_p8 = por %p265_p7, %p264_p6 }
  0x30   :  { %p267_p9 = pnand %p266_p8, %p260_p5 }
  0x32   :  { %270 = shalt.err (!%p267_p9)
}
  0x33   :  { %44 = dma.hbm_to_vmem [thread:$0]  %s393_s2, 16, %s42_s11, [#allocation7]  }
  0x34   :  { %293 = dma.done.wait [#allocation4], 128  }
  0x35   :  { %294 = vsyncadd [#allocation4], 4294967168 }
  0x36   :  { %295 = dma.done.wait [#allocation7], 272  }
  0x37   :  { %296 = vsyncadd [#allocation7], 4294967024  ;;  %vm59_vm0 = vcmask 261120   ;;  %v304_v0 = vmov 0.0   ;;  %vm305_vm1 = vmmov 0   ;;  %v198_v1 = vld [vmem:[#allocation6] sm:$0xff]  }
  0x38   :  { %180 = vmatprep.subr.bf16.mxu0 %v304_v0  ;;  %184 = vmatprep.mubr.msk.bf16.mxu0 %vm305_vm1, %v304_v0  ;;  %60 = vst.msk [vmem:[#allocation2] sm:$0xff] %vm59_vm0, %v304_v0  ;;  %61 = vst.msk [vmem:[#allocation2 + $0x8] sm:$0xff] %vm59_vm0, %v304_v0  ;;  %v199_v2 = vld [vmem:[#allocation6 + $0x8] sm:$0xff]   ;;  %v200_v3 = vld [vmem:[#allocation3] sm:$0xff]   ;;  %s306_s2 = smov [#allocation9]  }
  0x39   :  { %181 = vmatpush3.bf16.msra.mxu0 %v198_v1  ;;  %v176_v12 = vld [vmem:[#allocation8] ss:$0 sm:$0xff]  ;;  %s159_s22 = sshll.u32 %s306_s2, 4  ;;  %s160_s22 = int_to_ptr.vmem [resolvable:$true] %s159_s22 }
  0x3a   :  { %182 = vmatprep.subr.bf16.mxu0 %v304_v0  ;;  %s271_s23 = scalar_lea.vmem %s160_s22, 256  ;;  %p276_p11 = scmp.lt.s32.totalorder %s160_s22, %s160_s22 }
  0x3b   :  { %p272_p10 = scmp.ne.s32.totalorder %s160_s22, %s271_s23  ;;  %p277_p12 = scmp.lt.s32.totalorder %s271_s23, %s271_s23 }
  0x3d   :  { %183 = vmatpush3.bf16.msra.mxu0 %v199_v2  ;;  %p278_p13 = por %p277_p12, %p276_p11 }
  0x3f   :  { %v62_v4 = vld [vmem:[#allocation2] sm:$0xff]  ;;  %v63_v6 = vld [vmem:[#allocation2 + $0x8] sm:$0xff]  ;;  %p279_p0 = pnand %p278_p13, %p272_p10 }
  0x40   :  { %185 = vmatmul.mubr.msk.bf16.vlgmr.msra.gmra.mrb[0].mxu0 %vm59_vm0, %v200_v3 }
 0x113   :  { %v125_v5 = vpop.f32.mrb[0].mxu0 }
 0x114   :  { %v132_v7 = vadd.f32 %v125_v5, %v62_v4  ;;  %v186_v8 = vpop.f32.mrb[1].mxu0 }
 0x115   :  { %v128_v9 = vpop.f32.mrb[2].mxu0 }
 0x116   :  { %134 = vst.msk [vmem:[#allocation2] sm:$0xff] %vm59_vm0, %v132_v7  ;;  %v133_v10 = vadd.f32 %v128_v9, %v63_v6  ;;  %v187_v11 = vpop.f32.mrb[3].mxu0 }
 0x118   :  { %135 = vst.msk [vmem:[#allocation2 + $0x8] sm:$0xff] %vm59_vm0, %v133_v10 }
 0x11d   :  { %v139_v13 = vld [vmem:[#allocation2] sm:$0xff] }
 0x11e   :  { %v148_v14 = vadd.f32 %v176_v12, %v139_v13 }
 0x11f   :  { %v140_v15 = vld [vmem:[#allocation2 + $0x8] sm:$0xff] }
 0x120   :  { %v149_v16 = vadd.f32 %v176_v12, %v140_v15  ;;  %201 = vtanh.f32 %v148_v14 }
 0x122   :  { %203 = vtanh.f32 %v149_v16 }
 0x12a   :  { %v202_v17 = vpop.eup %201 }
 0x12b   :  { %152 = vst.msk [vmem:[#allocation9] sm:$0xff] %vm59_vm0, %v202_v17 }
 0x12c   :  { %v204_v18 = vpop.eup %203 }
 0x12d   :  { %153 = vst.msk [vmem:[#allocation9 + $0x8] sm:$0xff] %vm59_vm0, %v204_v18 }
 0x12e   :  { %282 = shalt.err (!%p279_p0)
}
 0x12f   :  { %s283_s26 = scalar_lea.hbm %s394_s3, 256 }
 0x130   :  { %p284_p1 = scmp.ne.s32.totalorder %s394_s3, %s283_s26  ;;  %p287_p2 = scmp.lt.u32.totalorder %s283_s26, %s394_s3 }
 0x132   :  { %p289_p3 = pnand %p287_p2, %p284_p1 }
 0x134   :  { %292 = shalt.err (!%p289_p3)
}
 0x135   :  { %s307_s4 = smov 128   ;;  %s308_s5 = smov 8  }
 0x136   :  { %165 = dma.vmem_to_hbm [thread:$0]  %s160_s22, 256, %s394_s3, [#allocation5], %s307_s4, %s307_s4, %s308_s5  }
 0x137   :  { %297 = dma.done.wait [#allocation5], 256  }
 0x138   :  { %298 = vsyncadd [#allocation5], 4294967040 }
 0x139   :  { %169 = vsyncpa [#allocation4], 1 }
 0x13a   :  { %170 = vsyncpa [#allocation7], 1 }
 0x13b   :  { %171 = vsyncpa [#allocation5], 1 }

</bundles_post_ra>
